<compile_context>
chip_gen: v6e
topology: v6e:2x2x1
jax: 0.10.0
libtpu: 0.0.40
codegen_flags: <defaults>
</compile_context>

<pallas_src>
import math

import jax
import jax.numpy as jnp
from jax import lax
from jax.experimental import pallas as pl
from jax.experimental.pallas import tpu as pltpu


def _lora_kernel(x_ref, a_ref, b_ref, o_ref, xa_ref):
    # x_ref : (tm, in_features)   current row tile of the flattened input
    # a_ref : (rank, in_features) whole lora_A (transposed), resident in VMEM
    # b_ref : (rank, tn)          out-feature tile of lora_B
    # o_ref : (tm, tn)            output tile
    # xa_ref: (tm, rank) f32      scratch: x @ lora_A, cached across the j axis
    @pl.when(pl.program_id(1) == 0)
    def _():
        # Per-tile cast keeps the x HBM stream in its native dtype (no-op when
        # dtypes already match); f32 accumulation on the MXU.
        x = x_ref[...].astype(a_ref.dtype)
        xa_ref[...] = lax.dot_general(
            x, a_ref[...],
            dimension_numbers=(((1,), (1,)), ((), ())),
            preferred_element_type=jnp.float32,
        )

    # Second matmul: keep xa in f32 (no downcast — op is memory-bound, the
    # cast would only cost accuracy).  b tile is tiny, cast is negligible.
    out = jnp.dot(xa_ref[...], b_ref[...].astype(jnp.float32),
                  preferred_element_type=jnp.float32)
    o_ref[...] = out.astype(o_ref.dtype)


def _round_up(x, m):
    return ((x + m - 1) // m) * m


_TM_CANDIDATES = (2048, 1024, 512, 256, 128, 64, 32, 16, 8)
_TN_CANDIDATES = (2048, 1024, 512, 256, 128)


def _pick_tiles(M, N, in_features, rank, x_itemsize, ab_itemsize, out_itemsize):
    """Chip-aware (tm, tn) selection using layout-padded VMEM sizes."""
    try:
        vmem_bytes = int(pltpu.get_tpu_info().vmem_capacity_bytes)
    except Exception:
        vmem_bytes = 64 << 20  # conservative default (v7x per-core VMEM)
    # v5e/v6e (128 MiB VMEM) can afford a larger slice than v7x (64 MiB).
    frac = 0.70 if vmem_bytes >= (96 << 20) else 0.50
    budget = int(vmem_bytes * frac)

    in_pad = _round_up(in_features, 128)   # lane padding of x tile / A rows
    rank_sub = _round_up(rank, 8)          # sublane padding of A / B
    # Resident lora_A stored as (rank, in_features): rank on sublanes,
    # in_features on lanes -> ~16x smaller than (in_features, rank) at rank=8.
    a_bytes = rank_sub * in_pad * ab_itemsize

    n_full = _round_up(N, 128)
    # Keep >= 2 row tiles whenever possible so the "parallel" i axis can be
    # sharded across the two TensorCores on v7x.
    m_cap = max(8, _round_up(-(-M // 2), 8))

    best_tm, best_tn, best_area = 8, min(128, n_full), 0
    for tn_c in _TN_CANDIDATES:
        tn = min(tn_c, n_full)
        for tm_c in _TM_CANDIDATES:
            tm = min(tm_c, m_cap)
            need = (
                2 * tm * in_pad * x_itemsize        # x tiles (double-buffered)
                + a_bytes                           # resident lora_A (single copy)
                + 2 * rank_sub * tn * ab_itemsize   # lora_B tiles (double-buffered)
                + 2 * tm * tn * out_itemsize        # output tiles (double-buffered, OUT dtype)
                + tm * 128 * 4                      # (tm, rank) f32 xa scratch (rank pads to 128 lanes)
                + tm * tn * 4                       # f32 second-matmul temporary
            )
            if need <= budget:
                if tm * tn > best_area:
                    best_area = tm * tn
                    best_tm, best_tn = tm, tn
                break
    return best_tm, best_tn, vmem_bytes


def lora_forward(x, lora_A, lora_B, *, compute_dtype=None, block_m=None, block_n=None):
    """Computes x @ lora_A @ lora_B with a Pallas TPU kernel.

    x:       [..., in_features]
    lora_A:  [in_features, rank]
    lora_B:  [rank, out_features]
    compute_dtype: optional MXU input dtype (e.g. jnp.bfloat16). x stays in
        its native dtype in HBM (cast per tile inside the kernel); lora_A /
        lora_B (tiny) are cast in the wrapper. Accumulation is always f32.
    returns: [..., out_features] in x.dtype
    """
    in_features, rank = lora_A.shape
    rank_b, out_features = lora_B.shape
    assert rank == rank_b
    assert x.shape[-1] == in_features

    out_dtype = x.dtype
    mxu_dtype = jnp.dtype(compute_dtype) if compute_dtype is not None else jnp.dtype(x.dtype)

    # lora_A / lora_B are tiny; transposing / casting them costs ~nothing in HBM.
    a_t = jnp.asarray(lora_A.T, dtype=mxu_dtype)      # (rank, in_features)
    b = jnp.asarray(lora_B, dtype=mxu_dtype)          # (rank, out_features)

    lead_shape = x.shape[:-1]
    M = int(math.prod(lead_shape)) if lead_shape else 1
    x2d = x.reshape(M, in_features)

    tm, tn, vmem_bytes = _pick_tiles(
        M, out_features, in_features, rank,
        jnp.dtype(x2d.dtype).itemsize,
        jnp.dtype(mxu_dtype).itemsize,
        jnp.dtype(out_dtype).itemsize,
    )
    if block_m is not None:
        tm = _round_up(int(block_m), 8)
    if block_n is not None:
        tn = _round_up(int(block_n), 128)

    # Non-divisible grid: no wrapper-side padding or output slicing. Edge
    # blocks are masked on the output write; the contraction dims
    # (in_features, rank) are never tiled so no garbage mixes into valid rows.
    grid = (pl.cdiv(M, tm), pl.cdiv(out_features, tn))

    out2d = pl.pallas_call(
        _lora_kernel,
        out_shape=jax.ShapeDtypeStruct((M, out_features), out_dtype),
        grid_spec=pltpu.PrefetchScalarGridSpec(
            num_scalar_prefetch=0,
            grid=grid,
            in_specs=[
                pl.BlockSpec((tm, in_features), lambda i, j: (i, 0)),
                # Whole (transposed) lora_A resident in VMEM: single copy.
                pl.BlockSpec(memory_space=pltpu.MemorySpace.VMEM),
                pl.BlockSpec((rank, tn), lambda i, j: (0, j)),
            ],
            out_specs=pl.BlockSpec((tm, tn), lambda i, j: (i, j)),
            scratch_shapes=[pltpu.VMEM((tm, rank), jnp.float32)],
        ),
        compiler_params=pltpu.CompilerParams(
            # i parallel (megacore), j arbitrary (serial, required for the
            # cached x@A scratch to be reused across out-feature tiles).
            dimension_semantics=("parallel", "arbitrary"),
            vmem_limit_bytes=int(vmem_bytes * 0.85),
        ),
    )(x2d, a_t, b)

    return out2d.reshape(*lead_shape, out_features)


def init_lora_params(key, in_features, out_features, rank=8, dtype=jnp.float32):
    """Matches LoRALayer.__init__:
       lora_A: (in_features, rank), kaiming_normal_(mode='fan_in', relu) with
               fan_in = size(1) = rank  =>  std = sqrt(2 / rank).
       lora_B: zeros.
    """
    std = math.sqrt(2.0) / math.sqrt(rank)
    lora_A = std * jax.random.normal(key, (in_features, rank), dtype=dtype)
    lora_B = jnp.zeros((rank, out_features), dtype=dtype)
    return lora_A, lora_B


if __name__ == "__main__":
    key = jax.random.PRNGKey(0)
    k_x, k_a, k_b, k_x2 = jax.random.split(key, 4)

    batch, seq = 2, 8
    in_features, out_features, rank = 32, 32, 8

    x = jax.random.normal(k_x, (batch, seq, in_features), dtype=jnp.float32)

    # Module-faithful parameter init (lora_B is all zeros per __init__).
    lora_A, lora_B = init_lora_params(k_a, in_features, out_features, rank)

    out = lora_forward(x, lora_A, lora_B)
    jax.block_until_ready(out)
    ref = x @ lora_A @ lora_B
    assert out.shape == (batch, seq, out_features)
    assert jnp.allclose(out, ref, atol=1e-5, rtol=1e-5)

    # Non-zero B so the kernel path is exercised non-trivially.
    lora_B_nz = 0.02 * jax.random.normal(k_b, (rank, out_features), dtype=jnp.float32)
    out_nz = lora_forward(x, lora_A, lora_B_nz)
    jax.block_until_ready(out_nz)
    ref_nz = x @ lora_A @ lora_B_nz
    assert jnp.allclose(out_nz, ref_nz, atol=1e-4, rtol=1e-4)

    # Edge-block path: M (=15) and out_features (=72) are NOT tile multiples
    # (validates the no-pad / masked-edge-block design).
    in2, out2 = 40, 72
    x_r = jax.random.normal(k_x2, (3, 5, in2), dtype=jnp.float32)
    a_r = 0.1 * jax.random.normal(k_a, (in2, rank), dtype=jnp.float32)
    b_r = 0.1 * jax.random.normal(k_b, (rank, out2), dtype=jnp.float32)
    out_r = lora_forward(x_r, a_r, b_r)
    jax.block_until_ready(out_r)
    ref_r = x_r @ a_r @ b_r
    assert out_r.shape == (3, 5, out2)
    assert jnp.allclose(out_r, ref_r, atol=1e-4, rtol=1e-4)

    # Multi-out-feature-tile path (exercises the cached x@A scratch + pl.when
    # gating across j tiles) by forcing tn=128 with out_features=256.
    out3 = 256
    b3 = 0.05 * jax.random.normal(k_b, (rank, out3), dtype=jnp.float32)
    out_m = lora_forward(x, lora_A, b3, block_n=128)
    jax.block_until_ready(out_m)
    ref_m = x @ lora_A @ b3
    assert jnp.allclose(out_m, ref_m, atol=1e-4, rtol=1e-4)

    # bf16-on-the-MXU path: x stays f32 in HBM (per-tile cast in the kernel),
    # A/B cast in the wrapper (tiny); f32 accumulation, loose tolerance.
    out_bf16 = lora_forward(x, lora_A, lora_B_nz, compute_dtype=jnp.bfloat16)
    jax.block_until_ready(out_bf16)
    assert out_bf16.dtype == jnp.float32
    assert jnp.allclose(out_bf16, ref_nz, atol=5e-2, rtol=5e-2)

    print("KERNEL_OK")
</pallas_src>

<mosaic_0001>
module attributes {stable_mosaic.version = 11 : i64} {
  func.func @_lora_kernel(%arg0: i32, %arg1: i32, %arg2: memref<8x32xf32, #tpu.memory_space<vmem>>, %arg3: memref<8x32xf32, #tpu.memory_space<vmem>>, %arg4: memref<8x128xf32, #tpu.memory_space<vmem>>, %arg5: memref<8x128xf32, #tpu.memory_space<vmem>>, %arg6: memref<8x8xf32, #tpu.memory_space<vmem>>) attributes {dimension_semantics = [#tpu.dimension_semantics<parallel>, #tpu.dimension_semantics<arbitrary>], iteration_bounds = array<i64: 2, 1>, scalar_prefetch = 0 : i64, scratch_operands = 1 : i64, tpu.core_type = #tpu.core_type<tc>, window_params = [{transform_indices = @transform_0, window_bounds = array<i64: 8, 32>}, {pipeline_mode = #tpu.pipeline_mode<synchronous>, transform_indices = @transform_1, window_bounds = array<i64: 8, 32>}, {transform_indices = @transform_2, window_bounds = array<i64: 8, 128>}, {transform_indices = @transform_3, window_bounds = array<i64: 8, 128>}]} {
    %c0_i32 = arith.constant 0 : i32
    %0 = arith.cmpi eq, %arg1, %c0_i32 : i32
    %1 = arith.extui %0 : i1 to i32
    %c0_i32_0 = arith.constant 0 : i32
    %2 = arith.cmpi ne, %1, %c0_i32_0 : i32
    scf.if %2 {
      %c0_6 = arith.constant 0 : index
      %c0_7 = arith.constant 0 : index
      %7 = vector.load %arg2[%c0_6, %c0_7] : memref<8x32xf32, #tpu.memory_space<vmem>>, vector<8x32xf32>
      %c0_8 = arith.constant 0 : index
      %c0_9 = arith.constant 0 : index
      %8 = vector.load %arg3[%c0_8, %c0_9] : memref<8x32xf32, #tpu.memory_space<vmem>>, vector<8x32xf32>
      %cst_10 = arith.constant dense<0.000000e+00> : vector<8x8xf32>
      %9 = tpu.matmul %7, %8, %cst_10 {dimension_numbers = #tpu.dot_dimension_numbers<[1], [1], [0], [0], [0, 0, 1, 0], [], []>} : vector<8x32xf32>, vector<8x32xf32>, vector<8x8xf32> -> vector<8x8xf32>
      %c0_11 = arith.constant 0 : index
      %c0_12 = arith.constant 0 : index
      %10 = vector.load %arg6[%c0_11, %c0_12] : memref<8x8xf32, #tpu.memory_space<vmem>>, vector<8x8xf32>
      tpu.vector_store %arg6[%c0_11, %c0_12], %9 {strides = array<i32>} : memref<8x8xf32, #tpu.memory_space<vmem>>, vector<8x8xf32>,
    } else {
    }
    %c0 = arith.constant 0 : index
    %c0_1 = arith.constant 0 : index
    %3 = vector.load %arg6[%c0, %c0_1] : memref<8x8xf32, #tpu.memory_space<vmem>>, vector<8x8xf32>
    %c0_2 = arith.constant 0 : index
    %c0_3 = arith.constant 0 : index
    %4 = vector.load %arg4[%c0_2, %c0_3] : memref<8x128xf32, #tpu.memory_space<vmem>>, vector<8x128xf32>
    %cst = arith.constant dense<0.000000e+00> : vector<8x128xf32>
    %5 = tpu.matmul %3, %4, %cst {dimension_numbers = #tpu.dot_dimension_numbers<[1], [0], [0], [1], [0, 0, 1, 1], [], []>} : vector<8x8xf32>, vector<8x128xf32>, vector<8x128xf32> -> vector<8x128xf32>
    %c0_4 = arith.constant 0 : index
    %c0_5 = arith.constant 0 : index
    %6 = vector.load %arg5[%c0_4, %c0_5] : memref<8x128xf32, #tpu.memory_space<vmem>>, vector<8x128xf32>
    tpu.vector_store %arg5[%c0_4, %c0_5], %5 {strides = array<i32>} : memref<8x128xf32, #tpu.memory_space<vmem>>, vector<8x128xf32>,
    return
  }
  func.func @transform_0(%arg0: i32, %arg1: i32) -> (i32, i32) {
    %c0_i32 = arith.constant 0 : i32
    %c0_i32_0 = arith.constant 0 : i32
    return %arg0, %c0_i32 : i32, i32
  }
  func.func @transform_1(%arg0: i32, %arg1: i32) -> (i32, i32) {
    %c0_i32 = arith.constant 0 : i32
    %c0_i32_0 = arith.constant 0 : i32
    %c0_i32_1 = arith.constant 0 : i32
    return %c0_i32, %c0_i32_0 : i32, i32
  }
  func.func @transform_2(%arg0: i32, %arg1: i32) -> (i32, i32) {
    %c0_i32 = arith.constant 0 : i32
    %c0_i32_0 = arith.constant 0 : i32
    return %c0_i32, %arg1 : i32, i32
  }
  func.func @transform_3(%arg0: i32, %arg1: i32) -> (i32, i32) {
    %c0_i32 = arith.constant 0 : i32
    return %arg0, %arg1 : i32, i32
  }
}

</mosaic_0001>

<bundles_post_ra>
// kernel: tpu_custom_call.1
= control target key start
LH: loop header
LB: loop body
LE: loop exit
PB: predicated region body
PF: predicated region fallthrough
CT: control target
= control target key end

     0   :  { %8 = vsyncpa [#allocation4], 0  ;;  %s1006_s0 = inlined_call_operand.hbm [shape: f32[16,32], index: 0, kind: input, shape index: {}]   ;;  %s1007_s1 = inlined_call_operand.hbm [shape: f32[8,32], index: 1, kind: input, shape index: {}]   ;;  %s1008_s2 = inlined_call_operand.hbm [shape: f32[8,32], index: 2, kind: input, shape index: {}]   ;;  %s1009_s3 = inlined_call_operand.hbm [shape: f32[16,32], index: 3, kind: output, shape index: {}]  }
   0x1   :  { %10 = vsyncpa [#allocation4 + $0x1], 0 }
   0x2   :  { %11 = vsyncpa [#allocation7], 0 }
   0x3   :  { %12 = vsyncpa [#allocation5], 0 }
   0x4   :  { %14 = vsyncpa [#allocation5 + $0x1], 0  ;;  %s820_s12 = smov 0   ;;  %s822_s13 = smov 0  }
   0x5   :  { %s824_s14 = smov 0   ;;  %s826_s15 = smov 0  }
   0x6   :  { %s828_s16 = smov 0   ;;  %s830_s17 = smov 0  }
   0x7 LB: > { %s509_s18 = sadd.s32 4294967295, %s792_s17   ;;  %s510_s19 = sadd.s32 4294967294, %s792_s17   ;;  %s792_s17 = sphi %s830_s17, %s20_s17   ;;  %s788_s16 = sphi %s828_s16, %s1032_s16   ;;  %s784_s15 = sphi %s826_s15, %s1031_s15   ;;  %s780_s14 = sphi %s824_s14, %s1030_s14   ;;  %s776_s13 = sphi %s822_s13, %s1029_s13   ;;  %s772_s12 = sphi %s820_s12, %s1028_s12  }
   0x8   : > { %p52_p0 = scmp.ne.s32.totalorder %s776_s13, %s772_s12  ;;  %p854_p1 = scmp.eq.s32.totalorder %s509_s18, 0 }
   0x9   : > { %p858_p2 = scmp.eq.s32.totalorder %s509_s18, 1  ;;  %p131_p3 = scmp.eq.s32.totalorder %s510_s19, 1 }
   0xa   : > { %s1014_s20 = scalar_select %p854_p1, 1, 0 }
   0xb   : > { %s1015_s21 = scalar_select %p858_p2, 1, 0 }
   0xc   : > { %p864_p4 = por %p854_p1, %p52_p0  ;;  %p511_p5 = scmp.ge.s32.totalorder %s792_s17, 1 }
   0xd   : > { %p869_p6 = por %p131_p3, %p52_p0  ;;  %p138_p7 = scmp.lt.s32.totalorder %s792_s17, 3 }
   0xe   : > { %s1016_s22 = scalar_select %p864_p4, 1, 0 }
   0xf   : > { %s1017_s23 = scalar_select %p869_p6, 1, 0 }
  0x10   : > { %p874_p8 = pnand %p511_p5, %p138_p7  ;;  %s794_s25 = smov [#allocation6]  }
  0x11   : > { %s151_s26 = sshll.u32 %s794_s25, 4  ;;  %s795_s27 = smov [#allocation8]   ;;  %s152_s26 = int_to_ptr.vmem [resolvable:$true] %s151_s26 }
  0x12   : > { %s1018_s24 = scalar_select %p874_p8, 1, 0 }
  0x13   : > { %p555_p10 = pneg %p874_p8  ;;  %s164_s28 = sshll.u32 %s795_s27, 4  ;;  %s165_s28 = int_to_ptr.vmem [resolvable:$true] %s164_s28 }
  0x14   : > { %s639_s30 = scalar_lea.vmem %s152_s26, 128  ;;  %p647_p5 = scmp.lt.s32.totalorder %s152_s26, %s152_s26 }
  0x15   : > { %p883_p11 = pnand %p555_p10, %p854_p1  ;;  %p640_p13 = scmp.ne.s32.totalorder %s152_s26, %s639_s30 }
  0x16   : > { %p648_p7 = scmp.lt.s32.totalorder %s639_s30, %s639_s30 }
  0x17   : > { %p630_p12 = pneg %p883_p11 }
  0x18   : > { %p649_p9 = por %p648_p7, %p647_p5 }
  0x19   : > { %p642_p0 = pnand %p640_p13, %p630_p12 }
  0x1b   : > { %p643_p3 = pneg %p642_p0 }
  0x1d   : > { %p650_p6 = pnand %p649_p9, %p643_p3 }
  0x1f   : > { %653 = shalt.err (!%p650_p6)
}
  0x20   : > { %558 = dma.hbm_to_vmem [thread:$0]  (!%p883_p11), %s1007_s1, 128, %s152_s26, [#allocation7]  }
  0x21   : > { %s665_s6 = scalar_lea.vmem %s165_s28, 128  ;;  %p673_p13 = scmp.lt.s32.totalorder %s165_s28, %s165_s28 }
  0x22   : > { %p666_p10 = scmp.ne.s32.totalorder %s165_s28, %s665_s6  ;;  %p674_p0 = scmp.lt.s32.totalorder %s665_s6, %s665_s6 }
  0x24   : > { %p668_p1 = pnand %p666_p10, %p630_p12  ;;  %p675_p8 = por %p674_p0, %p673_p13 }
  0x26   : > { %p669_p4 = pneg %p668_p1 }
  0x28   : > { %p676_p2 = pnand %p675_p8, %p669_p4 }
  0x2a   : > { %679 = shalt.err (!%p676_p2)
}
  0x2b   : > { %561 = dma.hbm_to_vmem [thread:$0]  (!%p883_p11), %s1008_s2, 128, %s165_s28, [#allocation7]  }
  0x2c   : > { %s32_s9 = sadd.s32 1, %s788_s16  ;;  %s39_s10 = sadd.s32 1, %s780_s14 }
  0x2d   : > { %p34_p1 = scmp.ge.s32.totalorder %s32_s9, 2  ;;  %p46_p2 = scmp.ne.s32.totalorder %s780_s14, %s776_s13 }
  0x2e   : > { %p47_p4 = scmp.eq.s32.totalorder %s792_s17, 0  ;;  %p572_p6 = scmp.lt.s32.totalorder %s792_s17, 2 }
  0x2f   : > { %s1034_s9 = smov (%p34_p1, %s32_s9), 0  ;;  %p1020_p9 = scmp.ne.s32.totalorder %s1015_s21, 0 }
  0x30   : > { %p48_p8 = por %p47_p4, %p46_p2  ;;  %s36_s18 = ssub.s32 %s788_s16, %s1034_s9 }
  0x31   : > { %p915_p12 = por %p1020_p9, %p46_p2  ;;  %s175_s19 = sand.u32 1, %s780_s14  }
  0x32   : > { %p37_p3 = scmp.eq.s32.totalorder %s36_s18, 0  ;;  %s515_s25 = sshll.u32 %s175_s19, 3 }
  0x33   : > { %s516_s26 = sshll.u32 %s788_s16, 7  ;;  %s179_s4 = scalar_lea.vmem [#allocation3], %s515_s25 }
  0x34   : > { %s924_s27 = scalar_select %p37_p3, %s780_s14, %s39_s10  }
  0x35   : > { %s184_s30 = scalar_lea.hbm %s1006_s0, %s516_s26  ;;  %s186_s5 = sshll.u32 %s179_s4, 4  ;;  %s187_s5 = int_to_ptr.vmem [resolvable:$true] %s186_s5 }
  0x36   : > { %p931_p11 = pnand %p572_p6, %p48_p8  ;;  %s176_s6 = scalar_lea.sflag [#allocation4], %s175_s19 }
  0x37   : > { %s693_s7 = scalar_lea.vmem %s187_s5, 128  ;;  %s796_s8 = smov [#allocation3]  }
  0x38   : > { %p682_p5 = pneg %p931_p11  ;;  %p694_p7 = scmp.ne.s32.totalorder %s187_s5, %s693_s7 }
  0x39   : > { %s698_s10 = sshll.u32 %s796_s8, 4  ;;  %s699_s10 = int_to_ptr.vmem [resolvable:$false] %s698_s10 }
  0x3a   : > { %p696_p10 = pnand %p694_p7, %p682_p5  ;;  %s700_s18 = scalar_lea.vmem %s699_s10, 256 }
  0x3b   : > { %p701_p0 = scmp.lt.s32.totalorder %s187_s5, %s699_s10  ;;  %p702_p1 = scmp.lt.s32.totalorder %s700_s18, %s693_s7 }
  0x3c   : > { %p697_p13 = pneg %p696_p10 }
  0x3d   : > { %p703_p2 = por %p702_p1, %p701_p0 }
  0x3f   : > { %p704_p4 = pnand %p703_p2, %p697_p13 }
  0x41   : > { %707 = shalt.err (!%p704_p4)
}
  0x42   : > { %565 = dma.hbm_to_vmem [thread:$0]  (!%p931_p11), %s184_s30, 128, %s187_s5, %s176_s6  }
  0x43   : > { %p1023_p6 = scmp.ne.s32.totalorder %s1018_s24, 0 }
  0x44   : > { %s942_s19 = sand.u32 (!%p1023_p6), 1, %s776_s13   ;;  %p1024_p8 = scmp.ne.s32.totalorder (!%p1023_p6), %s1016_s22, 0 }
  0x45   : > { %195 = sbr.rel (%p1023_p6) target bundleno = 492 (0x1ec), region = 32  ;;  %s518_s25 = sshll.u32 (!%p1023_p6), %s942_s19, 3 }
  0x46   : > { %s198_s26 = scalar_lea.sflag (!%p1023_p6), [#allocation4], %s942_s19  ;;  %s201_s28 = scalar_lea.vmem (!%p1023_p6), [#allocation3], %s518_s25 }
  0x4a   : > { %759 = dma.done.wait (%p1024_p8), %s198_s26, 128  }
  0x4b   : > { %761 = vsyncadd (%p1024_p8), %s198_s26, 4294967168  ;;  %p1025_p9 = scmp.ne.s32.totalorder %s1014_s20, 0 }
  0x4d   : > { %763 = dma.done.wait (%p1025_p9), [#allocation7], 256  }
  0x4e   : > { %765 = vsyncadd (%p1025_p9), [#allocation7], 4294967040  ;;  %v797_v0 = vmov 0.0   ;;  %vm798_vm0 = vmmov 0   ;;  %vm238_vm1 = vcmask 261120   ;;  %v237_v1 = vld [vmem:[#allocation6] sm:$0xff] }
  0x4f   : > { %533 = vmatprep.subr.mxu0 %v797_v0  ;;  %535 = vmatprep.mubr.msk.f32.mxu0 %vm798_vm0, %v797_v0  ;;  %v236_v2 = vld [vmem:[%s201_s28] sm:$0xff]  ;;  %v318_v3 = vld [vmem:[#allocation8] sm:$0xff]  ;;  %vm315_vm2 = vcmask 64512   ;;  %s231_s20 = scalar_lea.vmem [#allocation9], %s518_s25  ;;  %s526_s24 = sshll.u32 %s784_s15, 7 }
  0x50   : > { %538 = vmatprep.subr.mxu1 %v797_v0  ;;  %540 = vmatprep.mubr.msk.f32.mxu1 %vm798_vm0, %v797_v0  ;;  %s409_s22 = sshll.u32 %s231_s20, 4  ;;  %s960_s4 = scalar_lea.hbm %s1009_s3, %s526_s24  ;;  %s955_s22 = int_to_ptr.vmem [resolvable:$true] %s409_s22 }
  0x51   : > { %534 = vmatpush3.xpose.msk.msra.mxu0 %vm238_vm1, %v237_v1  ;;  %539 = vmatpush3.msra.mxu1 %v318_v3  ;;  %s395_s5 = scalar_lea.sflag [#allocation5], %s942_s19  ;;  %s708_s21 = scalar_lea.vmem %s955_s22, 128 }
  0x52   : > { %p709_p3 = scmp.ne.s32.totalorder %s955_s22, %s708_s21  ;;  %s799_s15 = smov [#allocation9]  }
  0x53   : > { %s712_s6 = sshll.u32 %s799_s15, 4  ;;  %s713_s6 = int_to_ptr.vmem [resolvable:$false] %s712_s6 }
  0x54   : > { %536 = vmatmul.mubr.msk.f32.vlgmr.msra.gmra.mxu0 %vm238_vm1, %v236_v2  ;;  %p710_p11 = pnand %p709_p3, %p915_p12  ;;  %s714_s7 = scalar_lea.vmem %s713_s6, 256 }
  0x55   : > { %p715_p7 = scmp.lt.s32.totalorder %s955_s22, %s713_s6  ;;  %p716_p10 = scmp.lt.s32.totalorder %s714_s7, %s708_s21 }
  0x56   : > { %p711_p5 = pneg %p710_p11 }
  0x57   : > { %p717_p13 = por %p716_p10, %p715_p7 }
  0x59   : > { %p718_p0 = pnand %p717_p13, %p711_p5 }
 0x114   : > { %v311_v4 = vpop.f32.mrf.mxu0 }
 0x115   : > { %316 = vst.msk [vmem:[#allocation2] sm:$0xff] %vm315_vm2, %v311_v4 }
 0x116   : > { %v537_v5 = vpop.f32.mrf.mxu0 }
 0x11c   : > { %v317_v6 = vld [vmem:[#allocation2] sm:$0xff] }
 0x11d   : > { %541 = vmatmul.mubr.msk.f32.vlgmr.msra.gmra.mxu1 %vm315_vm2, %v317_v6 }
 0x1dd   : > { %v389_v7 = vpop.f32.mrf.mxu1 }
 0x1de   : > { %393 = vst [vmem:[%s231_s20] sm:$0xff] %v389_v7 }
 0x1df   : > { %v542_v8 = vpop.f32.mrf.mxu1 }
 0x1e0   : > { %721 = shalt.err (!%p718_p0)
}
 0x1e1   : > { %s722_s8 = scalar_lea.hbm %s960_s4, 128  ;;  %s726_s19 = scalar_lea.hbm %s1009_s3, 256 }
 0x1e2   : > { %p723_p1 = scmp.ne.s32.totalorder %s960_s4, %s722_s8  ;;  %p727_p6 = scmp.lt.s32.totalorder %s960_s4, %s1009_s3 }
 0x1e3   : > { %p728_p8 = scmp.lt.s32.totalorder %s726_s19, %s722_s8 }
 0x1e4   : > { %p724_p2 = pnand %p723_p1, %p915_p12 }
 0x1e5   : > { %p729_p9 = por %p728_p8, %p727_p6 }
 0x1e6   : > { %p725_p4 = pneg %p724_p2 }
 0x1e8   : > { %p730_p3 = pnand %p729_p9, %p725_p4 }
 0x1ea   : > { %733 = shalt.err (!%p730_p3)
}
 0x1eb   : > { %553 = dma.vmem_to_hbm [thread:$0]  (%p915_p12), %s955_s22, 128, %s960_s4, %s395_s5  }
 0x1ec PF: > { %s421_s28 = sand.u32 1, %s772_s12   ;;  %p1026_p11 = scmp.ne.s32.totalorder %s1017_s23, 0 }
 0x1ed   : > { %p1027_p5 = scmp.ge.s32.totalorder %s792_s17, 2  ;;  %s422_s20 = scalar_lea.sflag [#allocation5], %s421_s28 }
 0x1ef   : > { %p567_p7 = pnand %p1027_p5, %p1026_p11 }
 0x1f1   : > { %p568_p10 = pneg %p567_p7 }
 0x1f3   : > { %767 = dma.done.wait (%p568_p10), %s422_s20, 128  }
 0x1f4   : > { %769 = vsyncadd (%p568_p10), %s422_s20, 4294967168  ;;  %s20_s17 = sadd.s32 1, %s792_s17   ;;  %s1028_s12 = smov %s776_s13 }
 0x1f5   : > { %p17_p13 = scmp.ge.s32.totalorder %s20_s17, 4   ;;  %s1029_s13 = smov %s780_s14 }
 0x1f6   : > { %s1030_s14 = smov %s924_s27  ;;  %s1031_s15 = smov %s788_s16 }
 0x1f7   : > { %s1032_s16 = smov %s1034_s9  ;;  %19 = sbr.rel (!%p17_p13) target bundleno = 7 (0x7), region = 90 }
 0x1fc   :  { %427 = vsyncpa [#allocation4], 1 }
 0x1fd   :  { %429 = vsyncpa [#allocation4 + $0x1], 1 }
 0x1fe   :  { %430 = vsyncpa [#allocation7], 1 }
 0x1ff   :  { %431 = vsyncpa [#allocation5], 1 }
 0x200   :  { %433 = vsyncpa [#allocation5 + $0x1], 1 }

</bundles_post_ra>
